<compile_context>
chip_gen: v6e
topology: v6e:2x2x1
jax: 0.10.0
libtpu: 0.0.40
codegen_flags: <defaults>
</compile_context>

<pallas_src>
import jax
import jax.numpy as jnp
from jax.experimental import pallas as pl
from jax.experimental.pallas import tpu as pltpu


def _cdiv(a, b):
    return -(-a // b)


def _round_up(a, b):
    return _cdiv(a, b) * b


def block_kernel(x_ref, w1_ref, b1_ref, w2_ref, b2_ref, o_ref):
    # Native-dtype operand straight to the MXU; f32 accumulation.
    x = x_ref[...]
    h = jnp.tanh(
        jnp.dot(x, w1_ref[...], preferred_element_type=jnp.float32) + b1_ref[...]
    )
    # Cast intermediate back to the weight dtype for the second (native) MXU matmul.
    y = jnp.tanh(
        jnp.dot(h.astype(w2_ref.dtype), w2_ref[...],
                preferred_element_type=jnp.float32) + b2_ref[...]
    )
    # Residual add in f32 vregs; cast only at the store.
    o_ref[...] = (y + x.astype(jnp.float32)).astype(o_ref.dtype)


def block_forward(x, w1, b1, w2, b2, *, tile_m=512):
    """forward(x) = tanh(tanh(x @ w1 + b1) @ w2 + b2) + x

    x : (M, in_N)         activations (f32 or bf16)
    w1: (in_N, width)     pre-transposed vs. torch.nn.Linear.weight
    b1: (width,)
    w2: (width, out_N)    pre-transposed
    b2: (out_N,)
    Returns (M, out_N), same dtype as x.
    """
    M, in_N = x.shape
    in_N_w, width = w1.shape
    width_w, out_N = w2.shape
    assert in_N_w == in_N and width_w == width
    assert out_N == in_N, "residual requires out_N == in_N"

    LANE = 128
    in_pad = _round_up(in_N, LANE)
    width_pad = _round_up(width, LANE)
    out_pad = _round_up(out_N, LANE)

    # Largest row tile <= tile_m (multiple of 8), but keep >= 2 grid steps when
    # M allows it so both v7x TensorCores get work.
    tile_m_eff = max(8, min(_round_up(tile_m, 8), _round_up(_cdiv(M, 2), 8)))
    M_pad = _round_up(M, tile_m_eff)
    grid = (M_pad // tile_m_eff,)

    dt = x.dtype
    x_p = jnp.pad(x, ((0, M_pad - M), (0, in_pad - in_N)))
    w1_p = jnp.pad(w1.astype(dt), ((0, in_pad - in_N), (0, width_pad - width)))
    w2_p = jnp.pad(w2.astype(dt), ((0, width_pad - width), (0, out_pad - out_N)))
    # Biases are tiny; keep them f32 so the VPU/EUP math stays in f32 vregs (v5e-safe).
    b1_p = jnp.pad(b1.astype(jnp.float32).reshape(1, -1),
                   ((0, 0), (0, width_pad - width)))
    b2_p = jnp.pad(b2.astype(jnp.float32).reshape(1, -1),
                   ((0, 0), (0, out_pad - out_N)))

    # VMEM budget: double-buffered x/out tiles + weights + biases, with headroom.
    itemsize = jnp.dtype(dt).itemsize
    vmem_needed = (
        2 * tile_m_eff * in_pad * itemsize          # x tile, double-buffered
        + 2 * tile_m_eff * out_pad * itemsize       # out tile, double-buffered
        + 2 * (in_pad * width_pad + width_pad * out_pad) * itemsize  # weights
        + 2 * (width_pad + out_pad) * 4             # f32 biases
    )
    vmem_limit = int(min(max(2 * vmem_needed, 16 * 1024 * 1024), 64 * 1024 * 1024))

    out_padded = pl.pallas_call(
        block_kernel,
        out_shape=jax.ShapeDtypeStruct((M_pad, out_pad), dt),
        grid_spec=pltpu.PrefetchScalarGridSpec(
            num_scalar_prefetch=0,
            grid=grid,
            in_specs=[
                pl.BlockSpec((tile_m_eff, in_pad), lambda i: (i, 0)),   # x tile
                pl.BlockSpec((in_pad, width_pad), lambda i: (0, 0)),    # W1 (resident)
                pl.BlockSpec((1, width_pad), lambda i: (0, 0)),         # b1
                pl.BlockSpec((width_pad, out_pad), lambda i: (0, 0)),   # W2 (resident)
                pl.BlockSpec((1, out_pad), lambda i: (0, 0)),           # b2
            ],
            out_specs=pl.BlockSpec((tile_m_eff, out_pad), lambda i: (i, 0)),
        ),
        compiler_params=pltpu.CompilerParams(
            dimension_semantics=("parallel",),
            vmem_limit_bytes=vmem_limit,
        ),
    )(x_p, w1_p, b1_p, w2_p, b2_p)

    return out_padded[:M, :out_N]


def init_linear(key, in_features, out_features, dtype=jnp.float32):
    """Mimics torch.nn.Linear default init: U(-1/sqrt(fan_in), 1/sqrt(fan_in)).
    Weight returned pre-transposed: (in_features, out_features). Bias: (out_features,)."""
    k_w, k_b = jax.random.split(key)
    bound = 1.0 / (in_features ** 0.5)
    w = jax.random.uniform(k_w, (in_features, out_features), dtype,
                           minval=-bound, maxval=bound)
    b = jax.random.uniform(k_b, (out_features,), dtype, minval=-bound, maxval=bound)
    return w, b


if __name__ == "__main__":
    key = jax.random.PRNGKey(0)
    k_x, k_l1, k_l2 = jax.random.split(key, 3)

    batch = 64
    in_N = 32     # == out_N so the residual add is valid, as the module requires
    width = 64
    out_N = 32

    x = jax.random.normal(k_x, (batch, in_N), jnp.float32)
    w1, b1 = init_linear(k_l1, in_N, width)
    w2, b2 = init_linear(k_l2, width, out_N)

    # ---- f32 path ----
    out_f32 = jax.block_until_ready(block_forward(x, w1, b1, w2, b2, tile_m=512))
    ref_f32 = jnp.tanh(jnp.tanh(x @ w1 + b1) @ w2 + b2) + x
    assert out_f32.shape == ref_f32.shape
    assert jnp.allclose(out_f32, ref_f32, atol=1e-4, rtol=1e-4), "f32 mismatch vs reference"

    # ---- bf16-at-HBM-boundary path (f32 accumulation inside the kernel) ----
    xb = x.astype(jnp.bfloat16)
    w1b = w1.astype(jnp.bfloat16)
    w2b = w2.astype(jnp.bfloat16)
    out_bf16 = jax.block_until_ready(block_forward(xb, w1b, b1, w2b, b2, tile_m=512))
    ref_bf16 = (jnp.tanh(
        jnp.tanh(xb.astype(jnp.float32) @ w1b.astype(jnp.float32) + b1)
        @ w2b.astype(jnp.float32) + b2) + xb.astype(jnp.float32))
    assert out_bf16.dtype == jnp.bfloat16
    assert jnp.allclose(out_bf16.astype(jnp.float32), ref_bf16, atol=5e-2, rtol=5e-2), \
        "bf16 mismatch vs reference"

    print("KERNEL_OK")
</pallas_src>

<mosaic_0001>
module attributes {stable_mosaic.version = 11 : i64} {
  func.func @block_kernel(%arg0: i32, %arg1: memref<32x128xf32, #tpu.memory_space<vmem>>, %arg2: memref<128x128xf32, #tpu.memory_space<vmem>>, %arg3: memref<1x128xf32, #tpu.memory_space<vmem>>, %arg4: memref<128x128xf32, #tpu.memory_space<vmem>>, %arg5: memref<1x128xf32, #tpu.memory_space<vmem>>, %arg6: memref<32x128xf32, #tpu.memory_space<vmem>>) attributes {dimension_semantics = [#tpu.dimension_semantics<parallel>], iteration_bounds = array<i64: 2>, scalar_prefetch = 0 : i64, scratch_operands = 0 : i64, tpu.core_type = #tpu.core_type<tc>, window_params = [{transform_indices = @transform_0, window_bounds = array<i64: 32, 128>}, {pipeline_mode = #tpu.pipeline_mode<synchronous>, transform_indices = @transform_1, window_bounds = array<i64: 128, 128>}, {pipeline_mode = #tpu.pipeline_mode<synchronous>, transform_indices = @transform_2, window_bounds = array<i64: 1, 128>}, {pipeline_mode = #tpu.pipeline_mode<synchronous>, transform_indices = @transform_3, window_bounds = array<i64: 128, 128>}, {pipeline_mode = #tpu.pipeline_mode<synchronous>, transform_indices = @transform_4, window_bounds = array<i64: 1, 128>}, {transform_indices = @transform_5, window_bounds = array<i64: 32, 128>}]} {
    %c0 = arith.constant 0 : index
    %c0_0 = arith.constant 0 : index
    %0 = vector.load %arg1[%c0, %c0_0] : memref<32x128xf32, #tpu.memory_space<vmem>>, vector<32x128xf32>
    %c0_1 = arith.constant 0 : index
    %c0_2 = arith.constant 0 : index
    %1 = vector.load %arg2[%c0_1, %c0_2] : memref<128x128xf32, #tpu.memory_space<vmem>>, vector<128x128xf32>
    %cst = arith.constant dense<0.000000e+00> : vector<32x128xf32>
    %2 = tpu.matmul %0, %1, %cst {dimension_numbers = #tpu.dot_dimension_numbers<[1], [0], [0], [1], [0, 0, 1, 1], [], []>} : vector<32x128xf32>, vector<128x128xf32>, vector<32x128xf32> -> vector<32x128xf32>
    %c0_3 = arith.constant 0 : index
    %c0_4 = arith.constant 0 : index
    %3 = vector.load %arg3[%c0_3, %c0_4] : memref<1x128xf32, #tpu.memory_space<vmem>>, vector<1x128xf32>
    %4 = vector.broadcast %3 : vector<1x128xf32> to vector<32x128xf32>
    %5 = arith.addf %2, %4 : vector<32x128xf32>
    %6 = math.tanh %5 : vector<32x128xf32>
    %c0_5 = arith.constant 0 : index
    %c0_6 = arith.constant 0 : index
    %7 = vector.load %arg4[%c0_5, %c0_6] : memref<128x128xf32, #tpu.memory_space<vmem>>, vector<128x128xf32>
    %cst_7 = arith.constant dense<0.000000e+00> : vector<32x128xf32>
    %8 = tpu.matmul %6, %7, %cst_7 {dimension_numbers = #tpu.dot_dimension_numbers<[1], [0], [0], [1], [0, 0, 1, 1], [], []>} : vector<32x128xf32>, vector<128x128xf32>, vector<32x128xf32> -> vector<32x128xf32>
    %c0_8 = arith.constant 0 : index
    %c0_9 = arith.constant 0 : index
    %9 = vector.load %arg5[%c0_8, %c0_9] : memref<1x128xf32, #tpu.memory_space<vmem>>, vector<1x128xf32>
    %10 = vector.broadcast %9 : vector<1x128xf32> to vector<32x128xf32>
    %11 = arith.addf %8, %10 : vector<32x128xf32>
    %12 = math.tanh %11 : vector<32x128xf32>
    %13 = arith.addf %12, %0 : vector<32x128xf32>
    %c0_10 = arith.constant 0 : index
    %c0_11 = arith.constant 0 : index
    %14 = vector.load %arg6[%c0_10, %c0_11] : memref<32x128xf32, #tpu.memory_space<vmem>>, vector<32x128xf32>
    tpu.vector_store %arg6[%c0_10, %c0_11], %13 {strides = array<i32>} : memref<32x128xf32, #tpu.memory_space<vmem>>, vector<32x128xf32>,
    return
  }
  func.func @transform_0(%arg0: i32) -> (i32, i32) {
    %c0_i32 = arith.constant 0 : i32
    %c0_i32_0 = arith.constant 0 : i32
    return %arg0, %c0_i32 : i32, i32
  }
  func.func @transform_1(%arg0: i32) -> (i32, i32) {
    %c0_i32 = arith.constant 0 : i32
    %c0_i32_0 = arith.constant 0 : i32
    %c0_i32_1 = arith.constant 0 : i32
    return %c0_i32, %c0_i32_0 : i32, i32
  }
  func.func @transform_2(%arg0: i32) -> (i32, i32) {
    %c0_i32 = arith.constant 0 : i32
    %c0_i32_0 = arith.constant 0 : i32
    %c0_i32_1 = arith.constant 0 : i32
    return %c0_i32, %c0_i32_0 : i32, i32
  }
  func.func @transform_3(%arg0: i32) -> (i32, i32) {
    %c0_i32 = arith.constant 0 : i32
    %c0_i32_0 = arith.constant 0 : i32
    %c0_i32_1 = arith.constant 0 : i32
    return %c0_i32, %c0_i32_0 : i32, i32
  }
  func.func @transform_4(%arg0: i32) -> (i32, i32) {
    %c0_i32 = arith.constant 0 : i32
    %c0_i32_0 = arith.constant 0 : i32
    %c0_i32_1 = arith.constant 0 : i32
    return %c0_i32, %c0_i32_0 : i32, i32
  }
  func.func @transform_5(%arg0: i32) -> (i32, i32) {
    %c0_i32 = arith.constant 0 : i32
    %c0_i32_0 = arith.constant 0 : i32
    return %arg0, %c0_i32 : i32, i32
  }
}

</mosaic_0001>

<bundles_post_ra>
// kernel: tpu_custom_call.1
= control target key start
LH: loop header
LB: loop body
LE: loop exit
PB: predicated region body
PF: predicated region fallthrough
CT: control target
= control target key end

     0   :  { %10 = vsyncpa [#allocation3], 0  ;;  %s1258_s0 = inlined_call_operand.hbm [shape: f32[64,128], index: 0, kind: input, shape index: {}]   ;;  %s1259_s1 = inlined_call_operand.hbm [shape: f32[128,128], index: 1, kind: input, shape index: {}]   ;;  %s1260_s2 = inlined_call_operand.vmem [shape: f32[1,128], index: 2, kind: input, shape index: {}]   ;;  %s1261_s3 = inlined_call_operand.hbm [shape: f32[128,128], index: 3, kind: input, shape index: {}]   ;;  %s1262_s4 = inlined_call_operand.vmem [shape: f32[1,128], index: 4, kind: input, shape index: {}]   ;;  %s1263_s5 = inlined_call_operand.hbm [shape: f32[64,128], index: 5, kind: output, shape index: {}]  }
   0x1   :  { %12 = vsyncpa [#allocation3 + $0x1], 0 }
   0x2   :  { %13 = vsyncpa [#allocation6], 0 }
   0x3   :  { %14 = vsyncpa [#allocation4], 0 }
   0x4   :  { %16 = vsyncpa [#allocation4 + $0x1], 0  ;;  %s1029_s18 = smov 0   ;;  %s1031_s19 = smov 0  }
   0x5   :  { %s1033_s20 = smov 0   ;;  %s1035_s21 = smov 0  }
   0x6 LB: > { %s1050_s22 = sadd.s32 4294967295, %s989_s21   ;;  %s616_s23 = sadd.s32 4294967294, %s989_s21   ;;  %s989_s21 = sphi %s1035_s21, %s1286_s21   ;;  %s985_s20 = sphi %s1033_s20, %s1285_s20   ;;  %s981_s19 = sphi %s1031_s19, %s1284_s19   ;;  %s977_s18 = sphi %s1029_s18, %s1283_s18  }
   0x7   : > { %p42_p0 = scmp.ne.s32.totalorder %s981_s19, %s977_s18  ;;  %p1264_p1 = scmp.eq.s32.totalorder %s1050_s22, 0 }
   0x8   : > { %p150_p2 = scmp.eq.s32.totalorder %s1050_s22, 1  ;;  %p156_p3 = scmp.eq.s32.totalorder %s616_s23, 1 }
   0x9   : > { %p1059_p4 = por %p1264_p1, %p42_p0  ;;  %p617_p5 = scmp.ge.s32.totalorder %s989_s21, 1 }
   0xa   : > { %p1064_p6 = por %p156_p3, %p42_p0  ;;  %p163_p7 = scmp.lt.s32.totalorder %s989_s21, 3 }
   0xb   : > { %s1269_s24 = scalar_select %p1059_p4, 1, 0 }
   0xc   : > { %s1270_s25 = scalar_select %p1064_p6, 1, 0 }
   0xd   : > { %p1069_p8 = pnand %p617_p5, %p163_p7  ;;  %s991_s27 = smov [#allocation5]  }
   0xe   : > { %s175_s28 = sshll.u32 %s991_s27, 4  ;;  %s992_s30 = smov [#allocation7]   ;;  %s176_s28 = int_to_ptr.vmem [resolvable:$true] %s175_s28 }
   0xf   : > { %s1271_s26 = scalar_select %p1069_p8, 1, 0 }
  0x10   : > { %p766_p9 = pneg %p1069_p8  ;;  %s191_s6 = sshll.u32 %s992_s30, 4  ;;  %s192_s6 = int_to_ptr.vmem [resolvable:$true] %s191_s6 }
  0x11   : > { %s852_s7 = scalar_lea.vmem %s176_s28, 2048  ;;  %p860_p5 = scmp.lt.s32.totalorder %s176_s28, %s176_s28 }
  0x12   : > { %p1078_p11 = pnand %p766_p9, %p1264_p1  ;;  %p853_p13 = scmp.ne.s32.totalorder %s176_s28, %s852_s7 }
  0x13   : > { %p861_p7 = scmp.lt.s32.totalorder %s852_s7, %s852_s7 }
  0x14   : > { %p843_p12 = pneg %p1078_p11 }
  0x15   : > { %p862_p10 = por %p861_p7, %p860_p5 }
  0x16   : > { %p855_p0 = pnand %p853_p13, %p843_p12 }
  0x18   : > { %p856_p3 = pneg %p855_p0 }
  0x1a   : > { %p863_p9 = pnand %p862_p10, %p856_p3 }
  0x1c   : > { %866 = shalt.err (!%p863_p9)
}
  0x1d   : > { %s1265_s8 = smov 128   ;;  %s994_s9 = smov 8  }
  0x1e   : > { %769 = dma.hbm_to_vmem [thread:$0]  (!%p1078_p11), %s1259_s1, 2048, %s176_s28, [#allocation6], %s1265_s8, %s1265_s8, %s994_s9  }
  0x1f   : > { %s878_s12 = scalar_lea.vmem %s192_s6, 2048  ;;  %p886_p10 = scmp.lt.s32.totalorder %s192_s6, %s192_s6 }
  0x20   : > { %p879_p13 = scmp.ne.s32.totalorder %s192_s6, %s878_s12  ;;  %p887_p3 = scmp.lt.s32.totalorder %s878_s12, %s878_s12 }
  0x22   : > { %p881_p0 = pnand %p879_p13, %p843_p12  ;;  %p888_p7 = por %p887_p3, %p886_p10 }
  0x24   : > { %p882_p5 = pneg %p881_p0 }
  0x26   : > { %p889_p9 = pnand %p888_p7, %p882_p5 }
  0x28   : > { %892 = shalt.err (!%p889_p9)
}
  0x29   : > { %772 = dma.hbm_to_vmem [thread:$0]  (!%p1078_p11), %s1261_s3, 2048, %s192_s6, [#allocation6], %s1265_s8, %s1265_s8, %s994_s9  }
  0x2a   : > { %s1107_s15 = sadd.s32 1, %s989_s21   ;;  %s29_s16 = sadd.s32 1, %s985_s20 }
  0x2b   : > { %s26_s17 = ssub.s32 %s989_s21, %s1107_s15  ;;  %p36_p12 = scmp.ne.s32.totalorder %s985_s20, %s981_s19 }
  0x2c   : > { %p27_p13 = scmp.eq.s32.totalorder %s26_s17, 0  ;;  %p37_p0 = scmp.eq.s32.totalorder %s989_s21, 0 }
  0x2d   : > { %p1117_p5 = por %p150_p2, %p36_p12  ;;  %p783_p10 = scmp.lt.s32.totalorder %s989_s21, 2 }
  0x2e   : > { %s1123_s27 = scalar_select %p27_p13, %s985_s20, %s29_s16  }
  0x2f   : > { %s1273_s23 = scalar_select %p1117_p5, 1, 0 }
  0x30   : > { %p38_p3 = por %p37_p0, %p36_p12  ;;  %s208_s28 = sand.u32 1, %s985_s20  }
  0x31   : > { %s621_s29 = sshll.u32 %s208_s28, 5  ;;  %s636_s30 = sshll.u32 %s989_s21, 9 }
  0x32   : > { %s1130_s10 = scalar_lea.hbm %s1258_s0, %s636_s30  ;;  %s212_s11 = scalar_lea.vmem [#allocation2], %s621_s29 }
  0x33   : > { %s219_s12 = sshll.u32 %s212_s11, 4  ;;  %p1134_p2 = pnand %p783_p10, %p38_p3  ;;  %s1132_s12 = int_to_ptr.vmem [resolvable:$true] %s219_s12 }
  0x34   : > { %s1138_s14 = scalar_lea.sflag [#allocation3], %s208_s28  ;;  %s893_s16 = scalar_lea.hbm %s1130_s10, 512 }
  0x35   : > { %p894_p11 = scmp.ne.s32.totalorder %s1130_s10, %s893_s16  ;;  %p895_p7 = pneg %p1134_p2 }
  0x36   : > { %s898_s29 = scalar_lea.hbm %s1258_s0, 1024  ;;  %p899_p13 = scmp.lt.s32.totalorder %s1130_s10, %s1258_s0 }
  0x37   : > { %p896_p9 = pnand %p895_p7, %p894_p11  ;;  %p900_p0 = scmp.lt.s32.totalorder %s898_s29, %s893_s16 }
  0x39   : > { %p897_p12 = pneg %p896_p9  ;;  %p901_p10 = por %p900_p0, %p899_p13 }
  0x3b   : > { %p902_p3 = pnand %p901_p10, %p897_p12 }
  0x3d   : > { %905 = shalt.err (!%p902_p3)
}
  0x3e   : > { %s906_s28 = scalar_lea.vmem %s1132_s12, 512  ;;  %s995_s11 = smov [#allocation2]  }
  0x3f   : > { %p907_p1 = scmp.ne.s32.totalorder %s1132_s12, %s906_s28  ;;  %s911_s8 = sshll.u32 %s995_s11, 4  ;;  %s912_s8 = int_to_ptr.vmem [resolvable:$false] %s911_s8 }
  0x40   : > { %s913_s17 = scalar_lea.vmem %s912_s8, 1024  ;;  %p914_p9 = scmp.lt.s32.totalorder %s1132_s12, %s912_s8 }
  0x41   : > { %p909_p6 = pnand %p907_p1, %p895_p7  ;;  %p915_p5 = scmp.lt.s32.totalorder %s913_s17, %s906_s28 }
  0x43   : > { %p910_p11 = pneg %p909_p6  ;;  %p916_p4 = por %p915_p5, %p914_p9 }
  0x45   : > { %p917_p8 = pnand %p916_p4, %p910_p11 }
  0x47   : > { %920 = shalt.err (!%p917_p8)
}
  0x48   : > { %s1275_s16 = smov 128   ;;  %p1276_p1 = scmp.ne.s32.totalorder %s1271_s26, 0 }
  0x49   : > { %776 = dma.hbm_to_vmem [thread:$0]  (!%p1134_p2), %s1130_s10, 512, %s1132_s12, %s1138_s14, %s1275_s16, %s1275_s16, %s994_s9  }
  0x4a   : > { %231 = sbr.rel (%p1276_p1) target bundleno = 559 (0x22f), region = 40  ;;  %s1165_s30 = sand.u32 (!%p1276_p1), 1, %s981_s19  }
  0x4b   : > { %s625_s8 = sshll.u32 (!%p1276_p1), %s1165_s30, 5  ;;  %s234_s29 = scalar_lea.sflag (!%p1276_p1), [#allocation3], %s1165_s30 }
  0x4c   : > { %s1171_s13 = scalar_lea.vmem (!%p1276_p1), [#allocation2], %s625_s8  ;;  %p1277_p4 = scmp.ne.s32.totalorder (!%p1276_p1), %s1269_s24, 0 }
  0x4f   : > { %964 = dma.done.wait (%p1277_p4), %s234_s29, 512  }
  0x50   : > { %966 = vsyncadd (%p1277_p4), %s234_s29, 4294966784  ;;  %p1278_p6 = scmp.eq.s32.totalorder %s1050_s22, 0 }
  0x52   : > { %968 = dma.done.wait (%p1278_p6), [#allocation6], 4096   ;;  %p1279_p8 = pmov %p1278_p6 }
  0x53   : > { %v293_v0 = vld [vmem:[#allocation5 + $0x78] sm:$0xff]  ;;  %v292_v1 = vld [vmem:[#allocation5 + $0x70] sm:$0xff]  ;;  %v291_v2 = vld [vmem:[#allocation5 + $0x68] sm:$0xff]  ;;  %s271_s12 = scalar_lea.vmem [#allocation8], %s625_s8  ;;  %s637_s14 = sshll.u32 %s1050_s22, 9 }
  0x54   : > { %970 = vsyncadd (%p1279_p8), [#allocation6], 4294963200  ;;  %678 = vmatprep.subr.mxu0 %v293_v0  ;;  %v290_v3 = vld [vmem:[#allocation5 + $0x60] sm:$0xff]  ;;  %v289_v5 = vld [vmem:[#allocation5 + $0x58] sm:$0xff]  ;;  %s524_s6 = sshll.u32 %s271_s12, 4  ;;  %s1212_s11 = scalar_lea.hbm %s1263_s5, %s637_s14  ;;  %s1214_s6 = int_to_ptr.vmem [resolvable:$true] %s524_s6 }
  0x55   : > { %679 = vmatpush3.msra.mxu0 %v293_v0  ;;  %v1182_v4 = vld [vmem:[%s1171_s13] sm:$0xff]  ;;  %v405_v6 = vld [vmem:[#allocation7 + $0x78] sm:$0xff]  ;;  %v404_v7 = vld [vmem:[#allocation7 + $0x70] sm:$0xff]  ;;  %s511_s22 = scalar_lea.sflag [#allocation4], %s1165_s30  ;;  %s921_s17 = scalar_lea.vmem %s1214_s6, 512 }
  0x56   : > { %680 = vmatprep.subr.mxu0 %v292_v1  ;;  %710 = vmatprep.mubr.f32.mxu0 %v1182_v4  ;;  %v288_v8 = vld [vmem:[#allocation5 + $0x50] sm:$0xff]  ;;  %v403_v9 = vld [vmem:[#allocation7 + $0x68] sm:$0xff]  ;;  %v402_v11 = vld [vmem:[#allocation7 + $0x60] sm:$0xff]  ;;  %p922_p5 = scmp.ne.s32.totalorder %s1214_s6, %s921_s17  ;;  %p1280_p2 = scmp.ne.s32.totalorder %s1273_s23, 0 }
  0x57   : > { %681 = vmatpush3.msra.mxu0 %v292_v1  ;;  %716 = vmatprep.subr.mxu1 %v405_v6  ;;  %v287_v10 = vld [vmem:[#allocation5 + $0x48] sm:$0xff]  ;;  %v286_v12 = vld [vmem:[#allocation5 + $0x40] sm:$0xff]  ;;  %v401_v13 = vld [vmem:[#allocation7 + $0x58] sm:$0xff]  ;;  %s996_s16 = smov [#allocation8]  }
  0x58   : > { %682 = vmatprep.subr.mxu0 %v291_v2  ;;  %717 = vmatpush3.msra.mxu1 %v405_v6  ;;  %v285_v14 = vld [vmem:[#allocation5 + $0x38] sm:$0xff]  ;;  %v400_v15 = vld [vmem:[#allocation7 + $0x50] sm:$0xff]  ;;  %v283_v17 = vld [vmem:[#allocation5 + $0x28] sm:$0xff]  ;;  %p923_p7 = pnand %p922_p5, %p1280_p2  ;;  %s925_s8 = sshll.u32 %s996_s16, 4  ;;  %s926_s8 = int_to_ptr.vmem [resolvable:$false] %s925_s8 }
  0x59   : > { %683 = vmatpush3.msra.mxu0 %v291_v2  ;;  %718 = vmatprep.subr.mxu1 %v404_v7  ;;  %v284_v16 = vld [vmem:[#allocation5 + $0x30] sm:$0xff]  ;;  %v282_v18 = vld [vmem:[#allocation5 + $0x20] sm:$0xff]  ;;  %v281_v19 = vld [vmem:[#allocation5 + $0x18] sm:$0xff]  ;;  %s927_s29 = scalar_lea.vmem %s926_s8, 1024  ;;  %p928_p13 = scmp.lt.s32.totalorder %s1214_s6, %s926_s8 }
  0x5a   : > { %684 = vmatprep.subr.mxu0 %v290_v3  ;;  %719 = vmatpush3.msra.mxu1 %v404_v7  ;;  %v280_v20 = vld [vmem:[#allocation5 + $0x10] sm:$0xff]  ;;  %v279_v21 = vld [vmem:[#allocation5 + $0x8] sm:$0xff]  ;;  %v278_v22 = vld [vmem:[#allocation5] sm:$0xff]  ;;  %p924_p12 = pneg %p923_p7  ;;  %p929_p0 = scmp.lt.s32.totalorder %s927_s29, %s921_s17 }
  0x5b   : > { %685 = vmatpush3.msra.mxu0 %v290_v3  ;;  %720 = vmatprep.subr.mxu1 %v403_v9  ;;  %v1186_v23 = vld [vmem:[%s1171_s13 + $0x8] sm:$0xff]  ;;  %v1189_v24 = vld [vmem:[%s1171_s13 + $0x10] sm:$0xff]  ;;  %v1194_v25 = vld [vmem:[%s1171_s13 + $0x18] sm:$0xff] }
  0x5c   : > { %686 = vmatprep.subr.mxu0 %v289_v5  ;;  %721 = vmatpush3.msra.mxu1 %v403_v9  ;;  %v399_v26 = vld [vmem:[#allocation7 + $0x48] sm:$0xff]  ;;  %v398_v27 = vld [vmem:[#allocation7 + $0x40] sm:$0xff]  ;;  %v397_v28 = vld [vmem:[#allocation7 + $0x38] sm:$0xff]  ;;  %p930_p10 = por %p929_p0, %p928_p13 }
  0x5d   : > { %687 = vmatpush3.msra.mxu0 %v289_v5  ;;  %722 = vmatprep.subr.mxu1 %v402_v11  ;;  %v396_v29 = vld [vmem:[#allocation7 + $0x30] sm:$0xff]  ;;  %v395_v30 = vld [vmem:[#allocation7 + $0x28] sm:$0xff]  ;;  %v394_v31 = vld [vmem:[#allocation7 + $0x20] sm:$0xff] }
  0x5e   : > { %688 = vmatprep.subr.mxu0 %v288_v8  ;;  %723 = vmatpush3.msra.mxu1 %v402_v11  ;;  %v393_v32 = vld [vmem:[#allocation7 + $0x18] sm:$0xff]  ;;  %v392_v33 = vld [vmem:[#allocation7 + $0x10] sm:$0xff]  ;;  %v391_v34 = vld [vmem:[#allocation7 + $0x8] sm:$0xff]  ;;  %p931_p3 = pnand %p930_p10, %p924_p12 }
  0x5f   : > { %689 = vmatpush3.msra.mxu0 %v288_v8  ;;  %724 = vmatprep.subr.mxu1 %v401_v13  ;;  %v390_v35 = vld [vmem:[#allocation7] sm:$0xff] }
  0x60   : > { %690 = vmatprep.subr.mxu0 %v287_v10  ;;  %725 = vmatpush3.msra.mxu1 %v401_v13  ;;  %v629_v36 = vld [vmem:[%s1260_s2] ss:$0 sm:$0xff] }
  0x61   : > { %691 = vmatpush3.msra.mxu0 %v287_v10  ;;  %726 = vmatprep.subr.mxu1 %v400_v15  ;;  %v630_v49 = vld [vmem:[%s1262_s4] ss:$0 sm:$0xff] }
  0x62   : > { %692 = vmatprep.subr.mxu0 %v286_v12  ;;  %727 = vmatpush3.msra.mxu1 %v400_v15 }
  0x63   : > { %693 = vmatpush3.msra.mxu0 %v286_v12  ;;  %728 = vmatprep.subr.mxu1 %v399_v26 }
  0x64   : > { %694 = vmatprep.subr.mxu0 %v285_v14  ;;  %729 = vmatpush3.msra.mxu1 %v399_v26 }
  0x65   : > { %695 = vmatpush3.msra.mxu0 %v285_v14  ;;  %730 = vmatprep.subr.mxu1 %v398_v27 }
  0x66   : > { %696 = vmatprep.subr.mxu0 %v284_v16  ;;  %731 = vmatpush3.msra.mxu1 %v398_v27 }
  0x67   : > { %697 = vmatpush3.msra.mxu0 %v284_v16  ;;  %732 = vmatprep.subr.mxu1 %v397_v28 }
  0x68   : > { %698 = vmatprep.subr.mxu0 %v283_v17  ;;  %733 = vmatpush3.msra.mxu1 %v397_v28 }
  0x69   : > { %699 = vmatpush3.msra.mxu0 %v283_v17  ;;  %734 = vmatprep.subr.mxu1 %v396_v29 }
  0x6a   : > { %700 = vmatprep.subr.mxu0 %v282_v18  ;;  %735 = vmatpush3.msra.mxu1 %v396_v29 }
  0x6b   : > { %701 = vmatpush3.msra.mxu0 %v282_v18  ;;  %736 = vmatprep.subr.mxu1 %v395_v30 }
  0x6c   : > { %702 = vmatprep.subr.mxu0 %v281_v19  ;;  %737 = vmatpush3.msra.mxu1 %v395_v30 }
  0x6d   : > { %703 = vmatpush3.msra.mxu0 %v281_v19  ;;  %738 = vmatprep.subr.mxu1 %v394_v31 }
  0x6e   : > { %704 = vmatprep.subr.mxu0 %v280_v20  ;;  %739 = vmatpush3.msra.mxu1 %v394_v31 }
  0x6f   : > { %705 = vmatpush3.msra.mxu0 %v280_v20  ;;  %740 = vmatprep.subr.mxu1 %v393_v32 }
  0x70   : > { %706 = vmatprep.subr.mxu0 %v279_v21  ;;  %741 = vmatpush3.msra.mxu1 %v393_v32 }
  0x71   : > { %707 = vmatpush3.msra.mxu0 %v279_v21  ;;  %742 = vmatprep.subr.mxu1 %v392_v33 }
  0x72   : > { %708 = vmatprep.subr.mxu0 %v278_v22  ;;  %743 = vmatpush3.msra.mxu1 %v392_v33 }
  0x73   : > { %709 = vmatpush3.msra.mxu0 %v278_v22  ;;  %744 = vmatprep.subr.mxu1 %v391_v34 }
  0x74   : > { %711 = vmatmul.mubr.f32.vlgmr.msra.gmra.mxu0 %v1186_v23  ;;  %745 = vmatpush3.msra.mxu1 %v391_v34 }
  0x75   : > { %713 = vmatprep.mubr.f32.mxu0 %v1189_v24  ;;  %746 = vmatprep.subr.mxu1 %v390_v35 }
  0x76   : > { %747 = vmatpush3.msra.mxu1 %v390_v35 }
  0x78   : > { %714 = vmatmul.mubr.f32.gmra.mxu0 %v1194_v25 }
 0x134   : > { %v712_v37 = vpop.f32.mrf.mxu0 }
 0x135   : > { %v373_v38 = vadd.f32 %v712_v37, %v629_v36 }
 0x136   : > { %v367_v39 = vpop.f32.mrf.mxu0 }
 0x137   : > { %v368_v40 = vadd.f32 %v629_v36, %v367_v39 }
 0x138   : > { %v715_v41 = vpop.f32.mrf.mxu0 }
 0x139   : > { %825 = vtanh.f32 %v368_v40  ;;  %v383_v42 = vadd.f32 %v715_v41, %v629_v36 }
 0x13a   : > { %827 = vtanh.f32 %v373_v38  ;;  %v377_v43 = vpop.f32.mrf.mxu0 }
 0x13b   : > { %v378_v44 = vadd.f32 %v629_v36, %v377_v43 }
 0x13d   : > { %829 = vtanh.f32 %v378_v44 }
 0x13e   : > { %831 = vtanh.f32 %v383_v42 }
 0x146   : > { %v826_v45 = vpop.eup %825 }
 0x147   : > { %v828_v46 = vpop.eup %827  ;;  %748 = vmatprep.mubr.f32.mxu1 %v826_v45 }
 0x148   : > { %749 = vmatmul.mubr.f32.vlgmr.msra.gmra.mxu1 %v828_v46 }
 0x14a   : > { %v830_v47 = vpop.eup %829 }
 0x14b   : > { %v832_v48 = vpop.eup %831  ;;  %751 = vmatprep.mubr.f32.mxu1 %v830_v47 }
 0x14c   : > { %752 = vmatmul.mubr.f32.gmra.mxu1 %v832_v48 }
 0x208   : > { %v750_v50 = vpop.f32.mrf.mxu1 }
 0x209   : > { %v485_v51 = vadd.f32 %v750_v50, %v630_v49 }
 0x20a   : > { %v479_v52 = vpop.f32.mrf.mxu1 }
 0x20b   : > { %833 = vtanh.f32 %v485_v51  ;;  %v480_v53 = vadd.f32 %v630_v49, %v479_v52 }
 0x20c   : > { %v753_v54 = vpop.f32.mrf.mxu1 }
 0x20d   : > { %835 = vtanh.f32 %v480_v53  ;;  %v495_v55 = vadd.f32 %v753_v54, %v630_v49 }
 0x20e   : > { %v489_v56 = vpop.f32.mrf.mxu1 }
 0x20f   : > { %837 = vtanh.f32 %v495_v55  ;;  %v490_v57 = vadd.f32 %v630_v49, %v489_v56 }
 0x211   : > { %839 = vtanh.f32 %v490_v57 }
 0x218   : > { %v834_v58 = vpop.eup %833 }
 0x219   : > { %v503_v59 = vadd.f32 %v834_v58, %v1186_v23 }
 0x21a   : > { %v836_v60 = vpop.eup %835 }
 0x21b   : > { %507 = vst [vmem:[%s271_s12 + $0x8] sm:$0xff] %v503_v59  ;;  %v502_v61 = vadd.f32 %v836_v60, %v1182_v4 }
 0x21c   : > { %v838_v62 = vpop.eup %837 }
 0x21d   : > { %506 = vst [vmem:[%s271_s12] sm:$0xff] %v502_v61  ;;  %v505_v63 = vadd.f32 %v838_v62, %v1194_v25 }
 0x21e   : > { %v840_v0 = vpop.eup %839 }
 0x21f   : > { %509 = vst [vmem:[%s271_s12 + $0x18] sm:$0xff] %v505_v63  ;;  %v504_v1 = vadd.f32 %v840_v0, %v1189_v24 }
 0x221   : > { %508 = vst [vmem:[%s271_s12 + $0x10] sm:$0xff] %v504_v1 }
 0x222   : > { %934 = shalt.err (!%p931_p3)
}
 0x223   : > { %s935_s13 = scalar_lea.hbm %s1212_s11, 512  ;;  %s939_s9 = scalar_lea.hbm %s1263_s5, 1024 }
 0x224   : > { %p936_p11 = scmp.ne.s32.totalorder %s1212_s11, %s935_s13  ;;  %p940_p4 = scmp.lt.s32.totalorder %s1212_s11, %s1263_s5 }
 0x225   : > { %p941_p6 = scmp.lt.s32.totalorder %s939_s9, %s935_s13 }
 0x226   : > { %p937_p9 = pnand %p936_p11, %p1280_p2 }
 0x227   : > { %p942_p8 = por %p941_p6, %p940_p4 }
 0x228   : > { %p938_p1 = pneg %p937_p9 }
 0x22a   : > { %p943_p5 = pnand %p942_p8, %p938_p1 }
 0x22c   : > { %946 = shalt.err (!%p943_p5)
}
 0x22d   : > { %s997_s14 = smov 128   ;;  %s998_s7 = smov 8  }
 0x22e   : > { %764 = dma.vmem_to_hbm [thread:$0]  (%p1280_p2), %s1214_s6, 512, %s1212_s11, %s511_s22, %s997_s14, %s997_s14, %s998_s7  }
 0x22f PF: > { %s539_s28 = sand.u32 1, %s977_s18   ;;  %p1281_p7 = scmp.ne.s32.totalorder %s1270_s25, 0 }
 0x230   : > { %p1282_p12 = scmp.ge.s32.totalorder %s989_s21, 2  ;;  %s540_s17 = scalar_lea.sflag [#allocation4], %s539_s28 }
 0x232   : > { %p778_p13 = pnand %p1282_p12, %p1281_p7 }
 0x234   : > { %p779_p0 = pneg %p778_p13 }
 0x236   : > { %972 = dma.done.wait (%p779_p0), %s540_s17, 512  }
 0x237   : > { %974 = vsyncadd (%p779_p0), %s540_s17, 4294966784  ;;  %p19_p10 = scmp.ge.s32.totalorder %s1107_s15, 4   ;;  %s1283_s18 = smov %s981_s19 }
 0x238   : > { %s1284_s19 = smov %s985_s20  ;;  %s1285_s20 = smov %s1123_s27 }
 0x239   : > { %s1286_s21 = smov %s1107_s15  ;;  %21 = sbr.rel (!%p19_p10) target bundleno = 6 (0x6), region = 93 }
 0x23e   :  { %545 = vsyncpa [#allocation3], 1 }
 0x23f   :  { %547 = vsyncpa [#allocation3 + $0x1], 1 }
 0x240   :  { %548 = vsyncpa [#allocation6], 1 }
 0x241   :  { %549 = vsyncpa [#allocation4], 1 }
 0x242   :  { %551 = vsyncpa [#allocation4 + $0x1], 1 }

</bundles_post_ra>
